<compile_context>
chip_gen: v7x
topology: tpu7x:2x2x1
jax: 0.10.0
libtpu: 0.0.40
codegen_flags: <defaults>
</compile_context>

<pallas_src>
import jax
import jax.numpy as jnp
from jax.experimental import pallas as pl
from jax.experimental.pallas import tpu as pltpu


def mlp_kernel(p_ref, x_ref, o_ref):
    """p_ref: SMEM f32[17] = [w1(2x4 row-major), b1(4), w2(4), b2(1)].

    x_ref: VMEM (2, TB) feature-major input tile.
    o_ref: VMEM (1, TB) output tile.
    """
    x0 = x_ref[0:1, :].astype(jnp.float32)   # (1, TB)
    x1 = x_ref[1:2, :].astype(jnp.float32)   # (1, TB)

    # z starts at the output bias b2 (broadcast over the lane axis).
    z = jnp.zeros_like(x0) + p_ref[16]

    # Fully unrolled over the 4 hidden units: pure VPU FMAs + ReLU.
    for j in range(4):
        h = jnp.maximum(x0 * p_ref[j] + x1 * p_ref[4 + j] + p_ref[8 + j], 0.0)
        z = z + h * p_ref[12 + j]

    # exp / reciprocal inside sigmoid go to the (otherwise idle) EUP slot.
    o_ref[...] = jax.nn.sigmoid(z).astype(o_ref.dtype)


def mlp_forward(x, w1, b1, w2, b2, *, max_tile=8192):
    """x: (B, 2) (torch.nn.Linear convention). Returns (B, 1) in x.dtype.

    w1: (2, 4), b1: (4,), w2: (4, 1), b2: (1,)  (weights stored as (in, out),
    i.e. the transpose of torch's Linear.weight).
    """
    B = x.shape[0]
    dtype = x.dtype

    # Feature-major so the batch is the lane (last) axis.
    xt = x.T  # (2, B)

    # Pad the batch up to a multiple of the lane tile TB (multiple of 128).
    BP = max(pl.cdiv(B, 128) * 128, 128)
    TB = min(BP, max_tile)
    BP = pl.cdiv(BP, TB) * TB
    if BP != B:
        xt = jnp.pad(xt, ((0, 0), (0, BP - B)))

    # Pack all 17 parameters into one tiny f32 SMEM array.
    params = jnp.concatenate(
        [w1.reshape(-1), b1.reshape(-1), w2.reshape(-1), b2.reshape(-1)]
    ).astype(jnp.float32)  # (17,)

    out = pl.pallas_call(
        mlp_kernel,
        out_shape=jax.ShapeDtypeStruct((1, BP), dtype),
        grid=(BP // TB,),
        in_specs=[
            pl.BlockSpec(memory_space=pltpu.MemorySpace.SMEM),   # params
            pl.BlockSpec((2, TB), lambda i: (0, i)),             # x tile
        ],
        out_specs=pl.BlockSpec((1, TB), lambda i: (0, i)),
        compiler_params=pltpu.CompilerParams(
            dimension_semantics=("parallel",),
        ),
    )(params, xt)

    # Back to the torch layout (B, 1), dropping batch padding.
    return out[:, :B].T


def init_params(key):
    """Deterministic init mimicking torch.nn.Linear (uniform +-1/sqrt(fan_in))."""
    k1, k2, k3, k4 = jax.random.split(key, 4)
    lim1 = 1.0 / jnp.sqrt(2.0)  # fan_in = 2
    lim2 = 1.0 / jnp.sqrt(4.0)  # fan_in = 4
    # Stored as (in_features, out_features) = torch weight transposed.
    w1 = jax.random.uniform(k1, (2, 4), jnp.float32, -lim1, lim1)
    b1 = jax.random.uniform(k2, (4,), jnp.float32, -lim1, lim1)
    w2 = jax.random.uniform(k3, (4, 1), jnp.float32, -lim2, lim2)
    b2 = jax.random.uniform(k4, (1,), jnp.float32, -lim2, lim2)
    return w1, b1, w2, b2


def reference_forward(x, w1, b1, w2, b2):
    h = jnp.maximum(x @ w1 + b1, 0.0)
    return jax.nn.sigmoid(h @ w2 + b2)


if __name__ == "__main__":
    key = jax.random.PRNGKey(0)
    k_params, k_x1, k_x2 = jax.random.split(key, 3)
    w1, b1, w2, b2 = init_params(k_params)

    # Small batch of inputs with 2 features each (matches Linear(2, 4) input).
    x = jax.random.normal(k_x1, (8, 2), dtype=jnp.float32)
    out = jax.block_until_ready(mlp_forward(x, w1, b1, w2, b2))
    ref = reference_forward(x, w1, b1, w2, b2)
    assert out.shape == (8, 1)
    assert jnp.allclose(out, ref, atol=1e-5, rtol=1e-5)

    # Second check: batch not a multiple of 128 and a small tile to exercise
    # multiple grid steps (grid = 3).
    x2 = jax.random.normal(k_x2, (300, 2), dtype=jnp.float32)
    out2 = jax.block_until_ready(mlp_forward(x2, w1, b1, w2, b2, max_tile=128))
    ref2 = reference_forward(x2, w1, b1, w2, b2)
    assert out2.shape == (300, 1)
    assert jnp.allclose(out2, ref2, atol=1e-5, rtol=1e-5)

    print("KERNEL_OK")
</pallas_src>

<mosaic_0001>
module attributes {stable_mosaic.version = 11 : i64} {
  func.func @mlp_kernel(%arg0: i32, %arg1: memref<17xf32, #tpu.memory_space<smem>>, %arg2: memref<2x128xf32, #tpu.memory_space<vmem>>, %arg3: memref<1x128xf32, #tpu.memory_space<vmem>>) attributes {dimension_semantics = [#tpu.dimension_semantics<parallel>], iteration_bounds = array<i64: 1>, scalar_prefetch = 0 : i64, scratch_operands = 0 : i64, tpu.core_type = #tpu.core_type<tc>, window_params = [{transform_indices = @transform_0, window_bounds = array<i64: 17>}, {transform_indices = @transform_1, window_bounds = array<i64: 2, 128>}, {transform_indices = @transform_2, window_bounds = array<i64: 1, 128>}]} {
    %c0 = arith.constant 0 : index
    %c0_0 = arith.constant 0 : index
    %0 = vector.load %arg2[%c0, %c0_0] : memref<2x128xf32, #tpu.memory_space<vmem>>, vector<1x128xf32>
    %c1 = arith.constant 1 : index
    %c0_1 = arith.constant 0 : index
    %1 = vector.load %arg2[%c1, %c0_1] : memref<2x128xf32, #tpu.memory_space<vmem>>, vector<1x128xf32>
    %cst = arith.constant 0.000000e+00 : f32
    %2 = vector.broadcast %cst : f32 to vector<1x128xf32>
    %c16 = arith.constant 16 : index
    %3 = memref.load %arg1[%c16] : memref<17xf32, #tpu.memory_space<smem>>
    %4 = vector.broadcast %3 : f32 to vector<1x128xf32>
    %5 = arith.addf %2, %4 : vector<1x128xf32>
    %c0_2 = arith.constant 0 : index
    %6 = memref.load %arg1[%c0_2] : memref<17xf32, #tpu.memory_space<smem>>
    %7 = vector.broadcast %6 : f32 to vector<1x128xf32>
    %8 = arith.mulf %0, %7 : vector<1x128xf32>
    %c4 = arith.constant 4 : index
    %9 = memref.load %arg1[%c4] : memref<17xf32, #tpu.memory_space<smem>>
    %10 = vector.broadcast %9 : f32 to vector<1x128xf32>
    %11 = arith.mulf %1, %10 : vector<1x128xf32>
    %12 = arith.addf %8, %11 : vector<1x128xf32>
    %c8 = arith.constant 8 : index
    %13 = memref.load %arg1[%c8] : memref<17xf32, #tpu.memory_space<smem>>
    %14 = vector.broadcast %13 : f32 to vector<1x128xf32>
    %15 = arith.addf %12, %14 : vector<1x128xf32>
    %cst_3 = arith.constant 0.000000e+00 : f32
    %16 = vector.broadcast %cst_3 : f32 to vector<1x128xf32>
    %17 = arith.maximumf %15, %16 : vector<1x128xf32>
    %c12 = arith.constant 12 : index
    %18 = memref.load %arg1[%c12] : memref<17xf32, #tpu.memory_space<smem>>
    %19 = vector.broadcast %18 : f32 to vector<1x128xf32>
    %20 = arith.mulf %17, %19 : vector<1x128xf32>
    %21 = arith.addf %5, %20 : vector<1x128xf32>
    %c1_4 = arith.constant 1 : index
    %22 = memref.load %arg1[%c1_4] : memref<17xf32, #tpu.memory_space<smem>>
    %23 = vector.broadcast %22 : f32 to vector<1x128xf32>
    %24 = arith.mulf %0, %23 : vector<1x128xf32>
    %c5 = arith.constant 5 : index
    %25 = memref.load %arg1[%c5] : memref<17xf32, #tpu.memory_space<smem>>
    %26 = vector.broadcast %25 : f32 to vector<1x128xf32>
    %27 = arith.mulf %1, %26 : vector<1x128xf32>
    %28 = arith.addf %24, %27 : vector<1x128xf32>
    %c9 = arith.constant 9 : index
    %29 = memref.load %arg1[%c9] : memref<17xf32, #tpu.memory_space<smem>>
    %30 = vector.broadcast %29 : f32 to vector<1x128xf32>
    %31 = arith.addf %28, %30 : vector<1x128xf32>
    %cst_5 = arith.constant 0.000000e+00 : f32
    %32 = vector.broadcast %cst_5 : f32 to vector<1x128xf32>
    %33 = arith.maximumf %31, %32 : vector<1x128xf32>
    %c13 = arith.constant 13 : index
    %34 = memref.load %arg1[%c13] : memref<17xf32, #tpu.memory_space<smem>>
    %35 = vector.broadcast %34 : f32 to vector<1x128xf32>
    %36 = arith.mulf %33, %35 : vector<1x128xf32>
    %37 = arith.addf %21, %36 : vector<1x128xf32>
    %c2 = arith.constant 2 : index
    %38 = memref.load %arg1[%c2] : memref<17xf32, #tpu.memory_space<smem>>
    %39 = vector.broadcast %38 : f32 to vector<1x128xf32>
    %40 = arith.mulf %0, %39 : vector<1x128xf32>
    %c6 = arith.constant 6 : index
    %41 = memref.load %arg1[%c6] : memref<17xf32, #tpu.memory_space<smem>>
    %42 = vector.broadcast %41 : f32 to vector<1x128xf32>
    %43 = arith.mulf %1, %42 : vector<1x128xf32>
    %44 = arith.addf %40, %43 : vector<1x128xf32>
    %c10 = arith.constant 10 : index
    %45 = memref.load %arg1[%c10] : memref<17xf32, #tpu.memory_space<smem>>
    %46 = vector.broadcast %45 : f32 to vector<1x128xf32>
    %47 = arith.addf %44, %46 : vector<1x128xf32>
    %cst_6 = arith.constant 0.000000e+00 : f32
    %48 = vector.broadcast %cst_6 : f32 to vector<1x128xf32>
    %49 = arith.maximumf %47, %48 : vector<1x128xf32>
    %c14 = arith.constant 14 : index
    %50 = memref.load %arg1[%c14] : memref<17xf32, #tpu.memory_space<smem>>
    %51 = vector.broadcast %50 : f32 to vector<1x128xf32>
    %52 = arith.mulf %49, %51 : vector<1x128xf32>
    %53 = arith.addf %37, %52 : vector<1x128xf32>
    %c3 = arith.constant 3 : index
    %54 = memref.load %arg1[%c3] : memref<17xf32, #tpu.memory_space<smem>>
    %55 = vector.broadcast %54 : f32 to vector<1x128xf32>
    %56 = arith.mulf %0, %55 : vector<1x128xf32>
    %c7 = arith.constant 7 : index
    %57 = memref.load %arg1[%c7] : memref<17xf32, #tpu.memory_space<smem>>
    %58 = vector.broadcast %57 : f32 to vector<1x128xf32>
    %59 = arith.mulf %1, %58 : vector<1x128xf32>
    %60 = arith.addf %56, %59 : vector<1x128xf32>
    %c11 = arith.constant 11 : index
    %61 = memref.load %arg1[%c11] : memref<17xf32, #tpu.memory_space<smem>>
    %62 = vector.broadcast %61 : f32 to vector<1x128xf32>
    %63 = arith.addf %60, %62 : vector<1x128xf32>
    %cst_7 = arith.constant 0.000000e+00 : f32
    %64 = vector.broadcast %cst_7 : f32 to vector<1x128xf32>
    %65 = arith.maximumf %63, %64 : vector<1x128xf32>
    %c15 = arith.constant 15 : index
    %66 = memref.load %arg1[%c15] : memref<17xf32, #tpu.memory_space<smem>>
    %67 = vector.broadcast %66 : f32 to vector<1x128xf32>
    %68 = arith.mulf %65, %67 : vector<1x128xf32>
    %69 = arith.addf %53, %68 : vector<1x128xf32>
    %70 = arith.negf %69 : vector<1x128xf32>
    %71 = math.exp %70 : vector<1x128xf32>
    %cst_8 = arith.constant 1.000000e+00 : f32
    %72 = vector.broadcast %cst_8 : f32 to vector<1x128xf32>
    %73 = arith.addf %72, %71 : vector<1x128xf32>
    %74 = arith.divf %72, %73 : vector<1x128xf32>
    %c0_9 = arith.constant 0 : index
    %c0_10 = arith.constant 0 : index
    %75 = vector.load %arg3[%c0_9, %c0_10] : memref<1x128xf32, #tpu.memory_space<vmem>>, vector<1x128xf32>
    tpu.vector_store %arg3[%c0_9, %c0_10], %74 {strides = array<i32>} : memref<1x128xf32, #tpu.memory_space<vmem>>, vector<1x128xf32>,
    return
  }
  func.func @transform_0(%arg0: i32) -> i32 {
    %c0_i32 = arith.constant 0 : i32
    %c0_i32_0 = arith.constant 0 : i32
    return %c0_i32 : i32
  }
  func.func @transform_1(%arg0: i32) -> (i32, i32) {
    %c0_i32 = arith.constant 0 : i32
    %c0_i32_0 = arith.constant 0 : i32
    return %c0_i32, %arg0 : i32, i32
  }
  func.func @transform_2(%arg0: i32) -> (i32, i32) {
    %c0_i32 = arith.constant 0 : i32
    %c0_i32_0 = arith.constant 0 : i32
    return %c0_i32, %arg0 : i32, i32
  }
}

</mosaic_0001>

<bundles_post_ra>
// kernel: tpu_custom_call.1
= control target key start
LH: loop header
LB: loop body
LE: loop exit
PB: predicated region body
PF: predicated region fallthrough
CT: control target
= control target key end

     0   :  { %7 = vsyncpa [#allocation4], 0  ;;  %s237_s0 = inlined_call_operand.hbm [shape: f32[17], index: 0, kind: input, shape index: {}]   ;;  %s238_s1 = inlined_call_operand.vmem [shape: f32[2,128], index: 1, kind: input, shape index: {}]   ;;  %s239_s2 = inlined_call_operand.hbm [shape: f32[1,128], index: 2, kind: output, shape index: {}]  }
   0x1   :  { %8 = vsyncpa [#allocation3], 0  ;;  %s133_s11 = scalar_lea.hbm %s237_s0, 16 }
   0x2   :  { %p134_p0 = scmp.ne.s32.totalorder %s237_s0, %s133_s11  ;;  %p137_p1 = scmp.lt.u32.totalorder %s133_s11, %s237_s0 }
   0x4   :  { %p139_p2 = pnand %p137_p1, %p134_p0 }
   0x6   :  { %142 = shalt.err (!%p139_p2)
}
   0x7   :  { %s169_s16 = smov [#allocation2]  }
   0x8   :  { %16 = dma.hbm_to_smem %s237_s0, 16, %s169_s16, [#allocation4]  }
   0x9   :  { %165 = dma.done.wait [#allocation4], 16  }
   0xa   :  { %166 = vsyncadd [#allocation4], 4294967280 }
   0xb   :  { %22 = sfence }
   0xc   :  { %s28_s19 = sld [smem:[#allocation2]]  ;;  %s111_s20 = sld [smem:[#allocation2 + $0x4]]  ;;  %v23_v0 = vld [vmem:[%s238_s1] sm:$0x1]  ;;  %v24_v1 = vld [vmem:[%s238_s1 + $0x1] sm:$0x1] }
   0xd   :  { %s198_s21 = sld [smem:[#allocation2 + $0x10]]  ;;  %s114_s23 = sld [smem:[#allocation2 + $0x1]] }
   0xe   :  { %s112_s22 = sld [smem:[#allocation2 + $0x8]]  ;;  %s115_s24 = sld [smem:[#allocation2 + $0x5]] }
   0xf   :  { %s203_s27 = sld [smem:[#allocation2 + $0xc]]  ;;  %s205_s28 = sld [smem:[#allocation2 + $0x9]] }
  0x10   :  { %s118_s30 = sld [smem:[#allocation2 + $0x2]]  ;;  %s119_s3 = sld [smem:[#allocation2 + $0x6]] }
  0x11   :  { %s210_s4 = sld [smem:[#allocation2 + $0xd]]  ;;  %s212_s5 = sld [smem:[#allocation2 + $0xa]] }
  0x12   :  { %v29_v2 = vstv %s28_s19  ;;  %v32_v3 = vstv %s111_s20  ;;  %s122_s6 = sld [smem:[#allocation2 + $0x3]]  ;;  %s123_s7 = sld [smem:[#allocation2 + $0x7]] }
  0x13   :  { %v30_v4 = vmul.f32 %v29_v2, %v23_v0  ;;  %v33_v5 = vmul.f32 %v32_v3, %v24_v1  ;;  %s214_s8 = sld [smem:[#allocation2 + $0xb]]  ;;  %v44_v7 = vstv %s114_s23  ;;  %s216_s1 = sld [smem:[#allocation2 + $0xe]]  ;;  %v26_v27 = vstv %s198_s21 }
  0x14   :  { %v36_v6 = vstv %s112_s22  ;;  %v47_v8 = vstv %s115_s24  ;;  %v45_v10 = vmul.f32 %v44_v7, %v23_v0  ;;  %s125_s9 = sld [smem:[#allocation2 + $0xf]]  ;;  %s170_s10 = smov [#allocation5]  }
  0x15   :  { %v34_v9 = vadd.f32 %v33_v5, %v30_v4  ;;  %v48_v11 = vmul.f32 %v47_v8, %v24_v1  ;;  %v51_v12 = vstv %s205_s28  ;;  %v40_v19 = vstv %s203_s27  ;;  %s101_s11 = sshll.u32 %s170_s10, 4  ;;  %s102_s11 = int_to_ptr.vmem [resolvable:$true] %s101_s11 }
  0x16   :  { %v59_v13 = vstv %s118_s30  ;;  %v62_v14 = vstv %s119_s3  ;;  %s143_s12 = scalar_lea.vmem %s102_s11, 16  ;;  %s147_s13 = scalar_lea.vmem %s102_s11, 32 }
  0x17   :  { %v37_v15 = vadd.f32 %v36_v6, %v34_v9  ;;  %v49_v16 = vadd.f32 %v48_v11, %v45_v10  ;;  %v60_v17 = vmul.f32 %v59_v13, %v23_v0  ;;  %v63_v18 = vmul.f32 %v62_v14, %v24_v1  ;;  %p144_p3 = scmp.ne.s32.totalorder %s102_s11, %s143_s12  ;;  %p148_p4 = scmp.lt.s32.totalorder %s102_s11, %s102_s11 }
  0x18   :  { %v66_v20 = vstv %s212_s5  ;;  %v74_v21 = vstv %s122_s6  ;;  %v77_v22 = vstv %s123_s7  ;;  %v55_v28 = vstv %s210_s4  ;;  %p149_p5 = scmp.lt.s32.totalorder %s147_s13, %s143_s12 }
  0x19   :  { %v38_v23 = vmax.f32 %v37_v15, 0.0  ;;  %v52_v24 = vadd.f32 %v51_v12, %v49_v16  ;;  %v64_v25 = vadd.f32 %v63_v18, %v60_v17  ;;  %v75_v26 = vmul.f32 %v74_v21, %v23_v0 }
  0x1a   :  { %v78_v29 = vmul.f32 %v77_v22, %v24_v1  ;;  %v81_v33 = vstv %s214_s8  ;;  %v70_v34 = vstv %s216_s1  ;;  %v85_v42 = vstv %s125_s9  ;;  %p150_p6 = por %p149_p5, %p148_p4 }
  0x1b   :  { %v41_v30 = vmul.f32 %v40_v19, %v38_v23  ;;  %v53_v31 = vmax.f32 %v52_v24, 0.0  ;;  %v67_v32 = vadd.f32 %v66_v20, %v64_v25 }
  0x1c   :  { %v79_v35 = vadd.f32 %v78_v29, %v75_v26  ;;  %p151_p7 = pnand %p150_p6, %p144_p3 }
  0x1d   :  { %v42_v36 = vadd.f32 %v41_v30, %v26_v27  ;;  %v56_v37 = vmul.f32 %v55_v28, %v53_v31  ;;  %v68_v38 = vmax.f32 %v67_v32, 0.0 }
  0x1e   :  { %v82_v39 = vadd.f32 %v81_v33, %v79_v35 }
  0x1f   :  { %v57_v40 = vadd.f32 %v56_v37, %v42_v36  ;;  %v71_v41 = vmul.f32 %v70_v34, %v68_v38 }
  0x20   :  { %v83_v43 = vmax.f32 %v82_v39, 0.0 }
  0x21   :  { %v72_v44 = vadd.f32 %v71_v41, %v57_v40 }
  0x22   :  { %v86_v45 = vmul.f32 %v85_v42, %v83_v43 }
  0x24   :  { %v87_v46 = vadd.f32 %v86_v45, %v72_v44 }
  0x26   :  { %v126_v47 = vmul.f32 -1.442695, %v87_v46 }
  0x28   :  { %129 = vpow2.f32 %v126_v47 }
  0x32   :  { %v130_v48 = vpop.eup %129 }
  0x33   :  { %v91_v49 = vadd.f32 1.0, %v130_v48 }
  0x35   :  { %131 = vrcp.f32 %v91_v49 }
  0x3f   :  { %v132_v50 = vpop.eup %131 }
  0x40   :  { %94 = vst [vmem:[#allocation5] sm:$0x1] %v132_v50 }
  0x41   :  { %154 = shalt.err (!%p151_p7)
}
  0x42   :  { %s155_s16 = scalar_lea.hbm %s239_s2, 16 }
  0x43   :  { %p156_p8 = scmp.ne.s32.totalorder %s239_s2, %s155_s16  ;;  %p159_p9 = scmp.lt.u32.totalorder %s155_s16, %s239_s2 }
  0x45   :  { %p161_p10 = pnand %p159_p9, %p156_p8 }
  0x47   :  { %164 = shalt.err (!%p161_p10)
}
  0x48   :  { %104 = dma.vmem_to_hbm [thread:$0]  %s102_s11, 16, %s239_s2, [#allocation3]  }
  0x49   :  { %167 = dma.done.wait [#allocation3], 16  }
  0x4a   :  { %168 = vsyncadd [#allocation3], 4294967280 }
  0x4b   :  { %108 = vsyncpa [#allocation3], 1 }
  0x4c   :  { %109 = vsyncpa [#allocation4], 1 }

</bundles_post_ra>
